<compile_context>
chip_gen: v6e
topology: v6e:2x2x1
jax: 0.10.0
libtpu: 0.0.40
codegen_flags: <defaults>
</compile_context>

<pallas_src>
import jax
import jax.numpy as jnp
from jax.experimental import pallas as pl
from jax.experimental.pallas import tpu as pltpu


def _round_up(x, m):
    return (x + m - 1) // m * m


def _conv1x1_kernel(x_ref, wt_ref, b_ref, o_ref):
    # x_ref:  (C_in, t_hw)   -- spatial tile of one image, channels on sublanes
    # wt_ref: (C_out, C_in)  -- resident transposed weight
    # b_ref:  (C_out, 1)     -- resident bias (f32)
    # o_ref:  (C_out, t_hw)  -- lane-dense output tile (NCHW layout)
    acc = jnp.dot(wt_ref[...], x_ref[...], preferred_element_type=jnp.float32)
    o_ref[...] = (acc + b_ref[...]).astype(o_ref.dtype)


def _pick_tile(HW, C_in, C_out, n_batch, in_bytes, out_bytes,
               vmem_budget=12 * 1024 * 1024, t_cap=4096):
    """Largest 128-multiple spatial tile that fits a conservative VMEM budget
    (double-buffered X + out tiles), capped at t_cap, then shrunk (if possible)
    so the parallel grid has at least ~4 steps for v7x's two TensorCores."""
    per_col = 2 * (C_in * in_bytes + C_out * out_bytes)   # double-buffered
    t = max(128, (vmem_budget // per_col) // 128 * 128)
    t = min(t, _round_up(HW, 128), t_cap)
    while n_batch * pl.cdiv(HW, t) < 4 and t > 128:
        t = max(128, _round_up(t // 2, 128))
    return t


def conv1x1_nchw(x3d, w_t, b, *, compute_dtype=jnp.bfloat16):
    """1x1 convolution computed directly on the NCHW-flattened input.

    x3d: (N, C_in, HW), w_t: (C_out, C_in), b: (C_out,) -> (N, C_out, HW).
    Output dtype matches x3d's dtype; matmul operands are streamed in
    `compute_dtype` (f32 accumulation on the MXU). Pass compute_dtype=None to
    keep the input dtype (e.g. exact f32).
    """
    N, C_in, HW = x3d.shape
    C_out, C_in_w = w_t.shape
    assert C_in_w == C_in

    out_dtype = x3d.dtype
    if compute_dtype is not None and x3d.dtype != compute_dtype:
        # Precision/bandwidth tradeoff: stream activations + weights narrow.
        # In a fused pipeline this cast folds into the producing op for free.
        x3d = x3d.astype(compute_dtype)
        w_t = w_t.astype(compute_dtype)
    b2d = b.astype(jnp.float32).reshape(C_out, 1)

    in_bytes = jnp.dtype(x3d.dtype).itemsize
    out_bytes = jnp.dtype(out_dtype).itemsize
    t = _pick_tile(HW, C_in, C_out, N, in_bytes, out_bytes)
    num_tiles = pl.cdiv(HW, t)

    cost = pl.CostEstimate(
        flops=2 * N * C_out * C_in * HW,
        transcendentals=0,
        bytes_accessed=(N * C_in * HW * in_bytes          # X stream
                        + C_out * C_in * in_bytes          # W^T
                        + C_out * 4                        # bias
                        + N * C_out * HW * out_bytes),     # output
    )

    return pl.pallas_call(
        _conv1x1_kernel,
        out_shape=jax.ShapeDtypeStruct((N, C_out, HW), out_dtype),
        grid=(N, num_tiles),
        in_specs=[
            # X spatial tile of one image (batch dim squeezed out). The last
            # tile may be ragged; out-of-bounds columns hold unspecified data
            # but never contaminate valid columns (columns are independent in
            # a 1x1 conv) and their writeback is masked by Pallas.
            pl.BlockSpec((None, C_in, t), lambda n, j: (n, 0, j)),
            # Resident transposed weight (tiny, constant index_map).
            pl.BlockSpec((C_out, C_in), lambda n, j: (0, 0)),
            # Resident bias.
            pl.BlockSpec((C_out, 1), lambda n, j: (0, 0)),
        ],
        out_specs=pl.BlockSpec((None, C_out, t), lambda n, j: (n, 0, j)),
        compiler_params=pltpu.CompilerParams(
            dimension_semantics=("parallel", "parallel")
        ),
        cost_estimate=cost,
    )(x3d, w_t, b2d)


class LandmarkHeadPallas:
    """JAX/Pallas equivalent of the PyTorch LandmarkHead module."""

    def __init__(self, input_channels=512, num_anchors=3, key=None,
                 compute_dtype=jnp.bfloat16):
        self.num_anchors = num_anchors
        self.input_channels = input_channels
        self.compute_dtype = compute_dtype
        out_ch = num_anchors * 10
        if key is None:
            key = jax.random.PRNGKey(0)
        kw, kb = jax.random.split(key)
        # Weight stored pre-transposed in matmul layout (C_out, C_in)
        # (the PyTorch conv weight is (C_out, C_in, 1, 1)).
        # Note: init is a scaled normal, not PyTorch's Conv2d default init;
        # irrelevant for loading trained weights or for the forward semantics.
        self.w_t = jax.random.normal(kw, (out_ch, input_channels), jnp.float32) * 0.02
        self.b = jax.random.normal(kb, (out_ch,), jnp.float32) * 0.02

    def __call__(self, x, compute_dtype="default"):
        # x: NCHW, (N, C_in, H, W)
        N, C, H, W = x.shape
        assert C == self.input_channels
        cd = self.compute_dtype if compute_dtype == "default" else compute_dtype
        x3d = x.reshape(N, C, H * W)  # free reshape, no transpose of the input
        out3d = conv1x1_nchw(x3d, self.w_t, self.b, compute_dtype=cd)
        A = self.num_anchors
        # Output-side permute of the small (A*10-channel) result only:
        # (N, A*10, HW) -> (N, HW, A*10) -> (N, HW*A, 10), i.e. exactly
        # PyTorch's permute(0, 2, 3, 1).contiguous().view(N, -1, 10).
        # Kept outside the kernel: fusing it would force masked 30-lane stores
        # and lose the lane-dense writeback.
        return jnp.transpose(out3d, (0, 2, 1)).reshape(N, H * W * A, 10)


def _reference_forward(x, w_t, b, num_anchors):
    """Pure-JAX f32 reference matching the PyTorch forward semantics."""
    N, C, H, W = x.shape
    x_nhwc = jnp.transpose(x, (0, 2, 3, 1)).astype(jnp.float32)
    out = jnp.einsum("nhwc,oc->nhwo", x_nhwc, w_t.astype(jnp.float32),
                     precision=jax.lax.Precision.HIGHEST) + b
    return out.reshape(N, H * W * num_anchors, 10)


if __name__ == "__main__":
    key = jax.random.PRNGKey(0)
    k_x1, k_x2, k_p = jax.random.split(key, 3)

    num_anchors = 3
    C_in = 32
    head = LandmarkHeadPallas(input_channels=C_in, num_anchors=num_anchors, key=k_p)

    # Case 1: aligned spatial extent (HW = 256, multiple of 128), bf16 streaming.
    N, H, W = 2, 16, 16
    x1 = jax.random.normal(k_x1, (N, C_in, H, W), jnp.float32)
    out1 = jax.block_until_ready(head(x1))
    assert out1.shape == (N, H * W * num_anchors, 10), out1.shape
    ref1 = _reference_forward(x1, head.w_t, head.b, num_anchors)
    assert jnp.allclose(out1, ref1, atol=1e-2, rtol=1e-2), \
        float(jnp.max(jnp.abs(out1 - ref1)))

    # Case 2: ragged spatial extent (HW = 160, NOT a multiple of 128) exercises
    # the masked tail block, checked in bf16-stream and exact-dtype modes.
    H2, W2 = 16, 10
    x2 = jax.random.normal(k_x2, (N, C_in, H2, W2), jnp.float32)
    ref2 = _reference_forward(x2, head.w_t, head.b, num_anchors)

    out2 = jax.block_until_ready(head(x2))
    assert out2.shape == (N, H2 * W2 * num_anchors, 10), out2.shape
    assert jnp.allclose(out2, ref2, atol=1e-2, rtol=1e-2), \
        float(jnp.max(jnp.abs(out2 - ref2)))

    out2_f32 = jax.block_until_ready(head(x2, compute_dtype=None))
    assert jnp.allclose(out2_f32, ref2, atol=2e-3, rtol=2e-3), \
        float(jnp.max(jnp.abs(out2_f32 - ref2)))

    print("KERNEL_OK")
</pallas_src>

<mosaic_0001>
module attributes {stable_mosaic.version = 11 : i64} {
  func.func @_conv1x1_kernel(%arg0: i32, %arg1: i32, %arg2: memref<1x32x128xbf16, #tpu.memory_space<vmem>>, %arg3: memref<30x32xbf16, #tpu.memory_space<vmem>>, %arg4: memref<30x1xf32, #tpu.memory_space<vmem>>, %arg5: memref<1x30x128xf32, #tpu.memory_space<vmem>>) attributes {dimension_semantics = [#tpu.dimension_semantics<parallel>, #tpu.dimension_semantics<parallel>], iteration_bounds = array<i64: 2, 2>, scalar_prefetch = 0 : i64, scratch_operands = 0 : i64, tpu.core_type = #tpu.core_type<tc>, window_params = [{transform_indices = @transform_0, window_bounds = array<i64: 1, 32, 128>}, {pipeline_mode = #tpu.pipeline_mode<synchronous>, transform_indices = @transform_1, window_bounds = array<i64: 30, 32>}, {pipeline_mode = #tpu.pipeline_mode<synchronous>, transform_indices = @transform_2, window_bounds = array<i64: 30, 1>}, {transform_indices = @transform_3, window_bounds = array<i64: 1, 30, 128>}]} {
    %c0 = arith.constant 0 : index
    %c0_0 = arith.constant 0 : index
    %0 = vector.load %arg3[%c0, %c0_0] : memref<30x32xbf16, #tpu.memory_space<vmem>>, vector<30x32xbf16>
    %c0_1 = arith.constant 0 : index
    %c0_2 = arith.constant 0 : index
    %c0_3 = arith.constant 0 : index
    %1 = vector.load %arg2[%c0_1, %c0_2, %c0_3] : memref<1x32x128xbf16, #tpu.memory_space<vmem>>, vector<1x32x128xbf16>
    %2 = vector.shape_cast %1 : vector<1x32x128xbf16> to vector<32x128xbf16>
    %cst = arith.constant dense<0.000000e+00> : vector<30x128xf32>
    %3 = tpu.matmul %0, %2, %cst {dimension_numbers = #tpu.dot_dimension_numbers<[1], [0], [0], [1], [0, 0, 1, 1], [], []>} : vector<30x32xbf16>, vector<32x128xbf16>, vector<30x128xf32> -> vector<30x128xf32>
    %c0_4 = arith.constant 0 : index
    %c0_5 = arith.constant 0 : index
    %4 = vector.load %arg4[%c0_4, %c0_5] : memref<30x1xf32, #tpu.memory_space<vmem>>, vector<30x1xf32>
    %5 = vector.broadcast %4 : vector<30x1xf32> to vector<30x128xf32>
    %6 = arith.addf %3, %5 : vector<30x128xf32>
    %c0_6 = arith.constant 0 : index
    %c0_7 = arith.constant 0 : index
    %c0_8 = arith.constant 0 : index
    %7 = vector.load %arg5[%c0_6, %c0_7, %c0_8] : memref<1x30x128xf32, #tpu.memory_space<vmem>>, vector<1x30x128xf32>
    %8 = vector.shape_cast %7 : vector<1x30x128xf32> to vector<30x128xf32>
    %9 = vector.shape_cast %6 : vector<30x128xf32> to vector<1x30x128xf32>
    tpu.vector_store %arg5[%c0_6, %c0_7, %c0_8], %9 {strides = array<i32>} : memref<1x30x128xf32, #tpu.memory_space<vmem>>, vector<1x30x128xf32>,
    return
  }
  func.func @transform_0(%arg0: i32, %arg1: i32) -> (i32, i32, i32) {
    %c0_i32 = arith.constant 0 : i32
    %c0_i32_0 = arith.constant 0 : i32
    return %arg0, %c0_i32, %arg1 : i32, i32, i32
  }
  func.func @transform_1(%arg0: i32, %arg1: i32) -> (i32, i32) {
    %c0_i32 = arith.constant 0 : i32
    %c0_i32_0 = arith.constant 0 : i32
    %c0_i32_1 = arith.constant 0 : i32
    return %c0_i32, %c0_i32_0 : i32, i32
  }
  func.func @transform_2(%arg0: i32, %arg1: i32) -> (i32, i32) {
    %c0_i32 = arith.constant 0 : i32
    %c0_i32_0 = arith.constant 0 : i32
    %c0_i32_1 = arith.constant 0 : i32
    return %c0_i32, %c0_i32_0 : i32, i32
  }
  func.func @transform_3(%arg0: i32, %arg1: i32) -> (i32, i32, i32) {
    %c0_i32 = arith.constant 0 : i32
    %c0_i32_0 = arith.constant 0 : i32
    return %arg0, %c0_i32, %arg1 : i32, i32, i32
  }
}

</mosaic_0001>

<bundles_post_ra>
// kernel: tpu_custom_call.1
= control target key start
LH: loop header
LB: loop body
LE: loop exit
PB: predicated region body
PF: predicated region fallthrough
CT: control target
= control target key end

     0   :  { %8 = vsyncpa [#allocation3], 0  ;;  %s843_s0 = inlined_call_operand.hbm [shape: bf16[2,32,256], index: 0, kind: input, shape index: {}]   ;;  %s844_s1 = inlined_call_operand.vmem [shape: bf16[30,32], index: 1, kind: input, shape index: {}]   ;;  %s845_s2 = inlined_call_operand.vmem [shape: f32[30,1], index: 2, kind: input, shape index: {}]   ;;  %s846_s3 = inlined_call_operand.vmem [shape: f32[2,30,256], index: 3, kind: output, shape index: {}]  }
   0x1   :  { %10 = vsyncpa [#allocation3 + $0x1], 0  ;;  %s685_s12 = smov 0   ;;  %s687_s13 = smov 0  }
   0x2   :  { %s689_s14 = smov 0   ;;  %s691_s15 = smov 0  }
   0x3   :  { %s693_s16 = smov 0   ;;  %s695_s17 = smov 0  }
   0x4   :  { %s697_s18 = smov 0   ;;  %s699_s19 = smov 0  }
   0x5 LB: > { %s450_s20 = sadd.s32 4294967295, %s658_s19   ;;  %s25_s21 = sadd.s32 1, %s650_s17  ;;  %s658_s19 = sphi %s699_s19, %s16_s19   ;;  %s654_s18 = sphi %s697_s18, %s857_s18   ;;  %s650_s17 = sphi %s695_s17, %s856_s17   ;;  %s646_s16 = sphi %s693_s16, %s855_s16   ;;  %s642_s15 = sphi %s691_s15, %s854_s15   ;;  %s638_s14 = sphi %s689_s14, %s853_s14   ;;  %s634_s13 = sphi %s687_s13, %s852_s13   ;;  %s630_s12 = sphi %s685_s12, %s851_s12  }
   0x6   : > { %p26_p0 = scmp.ge.s32.totalorder %s25_s21, 2  ;;  %s28_s22 = sadd.s32 1, %s654_s18 }
   0x7   : > { %s37_s23 = sadd.s32 1, %s638_s14  ;;  %p44_p1 = scmp.ne.s32.totalorder %s638_s14, %s634_s13 }
   0x8   : > { %s859_s21 = smov (%p26_p0, %s25_s21), 0  ;;  %s861_s22 = smov (!%p26_p0, %s28_s22), %s654_s18 }
   0x9   : > { %s33_s24 = ssub.s32 %s650_s17, %s859_s21  ;;  %p45_p2 = scmp.eq.s32.totalorder %s658_s19, 0 }
   0xa   : > { %p30_p3 = scmp.ge.s32.totalorder %s861_s22, 2  ;;  %p50_p4 = scmp.ne.s32.totalorder %s634_s13, %s630_s12 }
   0xb   : > { %p739_p5 = por %p45_p2, %p44_p1  ;;  %p51_p6 = scmp.eq.s32.totalorder %s450_s20, 0 }
   0xc   : > { %s863_s22 = smov (%p30_p3, %s861_s22), 0  ;;  %p118_p8 = scmp.eq.s32.totalorder %s450_s20, 3 }
   0xd   : > { %p745_p7 = por %p51_p6, %p50_p4  ;;  %s32_s27 = ssub.s32 %s654_s18, %s863_s22 }
   0xe   : > { %s34_s28 = sor.u32 %s33_s24, %s32_s27  ;;  %p754_p9 = por %p118_p8, %p44_p1 }
   0xf   : > { %p35_p10 = scmp.eq.s32.totalorder %s34_s28, 0  ;;  %p489_p11 = scmp.lt.s32.totalorder %s658_s19, 4 }
  0x10   : > { %s150_s30 = sand.u32 1, %s638_s14   ;;  %s455_s4 = sshll.u32 %s654_s18, 3 }
  0x11   : > { %s762_s5 = scalar_select %p35_p10, %s638_s14, %s37_s23  }
  0x12   : > { %s454_s6 = sshll.u32 %s150_s30, 4  ;;  %s159_s7 = sadd.s32 %s650_s17, %s455_s4 }
  0x13   : > { %s456_s8 = sshll.u32 %s159_s7, 6  ;;  %s154_s9 = scalar_lea.vmem [#allocation2], %s454_s6 }
  0x14   : > { %s162_s10 = sshll.u32 %s154_s9, 4  ;;  %s161_s20 = scalar_lea.hbm %s843_s0, %s456_s8  ;;  %s163_s10 = int_to_ptr.vmem [resolvable:$true] %s162_s10 }
  0x15   : > { %p770_p12 = pnand %p489_p11, %p739_p5  ;;  %p457_p13 = scmp.ge.s32.totalorder %s658_s19, 1 }
  0x16   : > { %s151_s27 = scalar_lea.sflag [#allocation3], %s150_s30  ;;  %s577_s23 = scalar_lea.vmem %s163_s10, 256 }
  0x17   : > { %p566_p0 = pneg %p770_p12  ;;  %p578_p1 = scmp.ne.s32.totalorder %s163_s10, %s577_s23 }
  0x18   : > { %s660_s28 = smov [#allocation2]  }
  0x19   : > { %p580_p2 = pnand %p578_p1, %p566_p0  ;;  %s582_s4 = sshll.u32 %s660_s28, 4  ;;  %s583_s4 = int_to_ptr.vmem [resolvable:$false] %s582_s4 }
  0x1a   : > { %s584_s6 = scalar_lea.vmem %s583_s4, 512  ;;  %p585_p4 = scmp.lt.s32.totalorder %s163_s10, %s583_s4 }
  0x1b   : > { %p581_p3 = pneg %p580_p2  ;;  %p586_p6 = scmp.lt.s32.totalorder %s584_s6, %s577_s23 }
  0x1d   : > { %p587_p8 = por %p586_p6, %p585_p4 }
  0x1f   : > { %p588_p5 = pnand %p587_p8, %p581_p3 }
  0x21   : > { %591 = shalt.err (!%p588_p5)
}
  0x22   : > { %s661_s25 = smov 128   ;;  %s662_s30 = smov 64  }
  0x23   : > { %s663_s7 = smov 4   ;;  %p170_p10 = scmp.lt.s32.totalorder %s658_s19, 5 }
  0x24   : > { %488 = dma.hbm_to_vmem [thread:$0]  (!%p770_p12), %s161_s20, 256, %s163_s10, %s151_s27, %s661_s25, %s662_s30, %s663_s7  }
  0x25   : > { %p171_p11 = pnand %p457_p13, %p170_p10 }
  0x26   : > { %s783_s8 = sand.u32 (!%p171_p11), 1, %s634_s13  }
  0x27   : > { %174 = sbr.rel (%p171_p11) target bundleno = 265 (0x109), region = 32  ;;  %s458_s9 = sshll.u32 (!%p171_p11), %s783_s8, 4 }
  0x28   : > { %s177_s11 = scalar_lea.sflag (!%p171_p11), [#allocation3], %s783_s8  ;;  %s180_s12 = scalar_lea.vmem (!%p171_p11), [#allocation2], %s458_s9 }
  0x2c   : > { %625 = dma.done.wait (%p745_p7), %s177_s11, 256  }
  0x2d   : > { %627 = vsyncadd (%p745_p7), %s177_s11, 4294967040  ;;  %v664_v0 = vmov 0   ;;  %v560_v1 = vld [vmem:[%s180_s12 + $0x8] sm:$0xff]   ;;  %v561_v2 = vld [vmem:[%s180_s12] sm:$0xff]   ;;  %vm257_vm0 = vcmask 261120   ;;  %s459_s9 = sshll.u32 %s783_s8, 5 }
  0x2e   : > { %559 = vset.pattern.permute.xlu1 %v664_v0  ;;  %558 = vset.pattern.permute.xlu0 %v664_v0  ;;  %v562_v3 = vld [vmem:[%s844_s1] sm:$0xff]   ;;  %v213_v4 = vld [vmem:[%s845_s2 + $0x10] sm:$0xff]  ;;  %v563_v6 = vld [vmem:[%s844_s1 + $0x8] sm:$0x7f]   ;;  %s201_s11 = scalar_lea.vmem [#allocation4], %s459_s9  ;;  %s467_s8 = sshll.u32 (%p754_p9), %s646_s16, 3 }
  0x2f   : > { %475 = vmatprep.subr.bf16.mxu0 %v560_v1  ;;  %479 = vmatprep.mubr.msk.bf16.mxu0 %vm257_vm0, %v562_v3  ;;  %v211_v5 = vld [vmem:[%s845_s2] sm:$0xff]  ;;  %v214_v7 = vld [vmem:[%s845_s2 + $0x18] sm:$0x3f]  ;;  %v212_v8 = vld [vmem:[%s845_s2 + $0x8] sm:$0xff]  ;;  %s325_s12 = sadd.s32 (%p754_p9), %s642_s15, %s467_s8 }
  0x30   : > { %476 = vmatpush3.bf16.msra.mxu0 %v560_v1  ;;  %227 = vperm.xlu1 %559, %v213_v4   ;;  %s468_s10 = sshll.u32 (%p754_p9), %s325_s12, 3 }
  0x31   : > { %477 = vmatprep.subr.bf16.mxu0 %v561_v2  ;;  %217 = vperm.xlu0 %558, %v211_v5   ;;  %s327_s27 = scalar_lea.vmem (%p754_p9), %s846_s3, %s468_s10 }
  0x34   : > { %478 = vmatpush3.bf16.msra.mxu0 %v561_v2  ;;  %232 = vperm.xlu1 %559, %v214_v7  }
  0x35   : > { %222 = vperm.xlu0 %558, %v212_v8  }
  0x37   : > { %480 = vmatmul.mubr.msk.bf16.vlgmr.msra.gmra.mxu0 %vm257_vm0, %v563_v6 }
  0xab   : > { %v228_v9 = vpop.permute.xlu1 %227 }
  0xac   : > { %v218_v10 = vpop.permute.xlu0 %217 }
  0xaf   : > { %v233_v15 = vpop.permute.xlu1 %232 }
  0xb0   : > { %v223_v18 = vpop.permute.xlu0 %222 }
  0xf7   : > { %v481_v11 = vpop.f32.mrf.mxu0 }
  0xf8   : > { %v307_v12 = vadd.f32 %v481_v11, %v228_v9 }
  0xf9   : > { %v298_v13 = vpop.f32.mrf.mxu0 }
  0xfa   : > { %315 = vst [vmem:[%s201_s11 + $0x10] sm:$0xff] %v307_v12  ;;  %v299_v14 = vadd.f32 %v298_v13, %v218_v10 }
  0xfb   : > { %v482_v16 = vpop.f32.mrf.mxu0 }
  0xfc   : > { %313 = vst [vmem:[%s201_s11] sm:$0xff] %v299_v14  ;;  %v310_v17 = vadd.f32 %v482_v16, %v233_v15  ;;  %323 = sbr.rel (!%p754_p9) target bundleno = 265 (0x109), region = 40 }
  0xfd   : > { %v301_v19 = vpop.f32.mrf.mxu0 }
  0xfe   : > { %316 = vst [vmem:[%s201_s11 + $0x18] sm:$0x3f] %v310_v17  ;;  %v302_v20 = vadd.f32 %v301_v19, %v223_v18 }
 0x100   : > { %314 = vst [vmem:[%s201_s11 + $0x8] sm:$0xff] %v302_v20 }
 0x101   : > { %v366_v23 = vld [vmem:[%s201_s11 + $0x10] sm:$0xff] }
 0x102   : > { %367 = vst [vmem:[%s327_s27 + $0x20] sm:$0xff] %v366_v23 }
 0x103   : > { %v362_v21 = vld [vmem:[%s201_s11] sm:$0xff] }
 0x104   : > { %363 = vst [vmem:[%s327_s27] sm:$0xff] %v362_v21 }
 0x105   : > { %v368_v24 = vld [vmem:[%s201_s11 + $0x18] sm:$0xff] }
 0x106   : > { %369 = vst [vmem:[%s327_s27 + $0x30] sm:$0xff] %v368_v24 }
 0x107   : > { %v364_v22 = vld [vmem:[%s201_s11 + $0x8] sm:$0xff] }
 0x108   : > { %365 = vst [vmem:[%s327_s27 + $0x10] sm:$0xff] %v364_v22 }
 0x109 PF: > { %s16_s19 = sadd.s32 1, %s658_s19   ;;  %s851_s12 = smov %s634_s13 }
 0x10a   : > { %p13_p7 = scmp.ge.s32.totalorder %s16_s19, 6   ;;  %s852_s13 = smov %s638_s14 }
 0x10b   : > { %s853_s14 = smov %s762_s5  ;;  %s854_s15 = smov %s650_s17 }
 0x10c   : > { %s855_s16 = smov %s654_s18  ;;  %s856_s17 = smov %s859_s21 }
 0x10d   : > { %s857_s18 = smov %s863_s22  ;;  %15 = sbr.rel (!%p13_p7) target bundleno = 5 (0x5), region = 110 }
 0x112   :  { %385 = vsyncpa [#allocation3], 1 }
 0x113   :  { %387 = vsyncpa [#allocation3 + $0x1], 1 }

</bundles_post_ra>
